<compile_context>
chip_gen: v6e
topology: v6e:2x2x1
jax: 0.10.0
libtpu: 0.0.40
codegen_flags: <defaults>
</compile_context>

<pallas_src>
import jax
import jax.numpy as jnp
from jax.experimental import pallas as pl
from jax.experimental.pallas import tpu as pltpu


def _mylistdense_kernel(x_ref, w_ref, o_ref):
    # out = x @ W  with K == 3, fully unrolled on the VPU:
    #   out = x[:,0:1]*W[0] + x[:,1:2]*W[1] + x[:,2:3]*W[2]
    # w_ref is a (3,) SMEM vector -> scalar reads, no XLU reduction, no MXU.
    x = x_ref[...]
    o_ref[...] = (x[:, 0:1] * w_ref[0]
                  + x[:, 1:2] * w_ref[1]
                  + x[:, 2:3] * w_ref[2])


def mylistdense_forward(x, w0, w1, w2, *, batch_tile=512):
    """x: (B, 3) float32; w0: (3,3); w1: (3,3); w2: (3,1) -> (B, 1).

    Semantics identical to the ParameterList loop (x @ w0 @ w1 @ w2); the
    weight product is pre-fused in the wrapper (associativity), so the kernel
    does a single 3-wide contraction.
    """
    B = x.shape[0]
    # Fuse the weight chain once, outside the kernel: (3,3)@(3,3)@(3,1) -> (3,)
    w_fused = (w0 @ w1 @ w2).reshape(3).astype(x.dtype)

    out_shape = jax.ShapeDtypeStruct((B, 1), x.dtype)
    w_spec = pl.BlockSpec(memory_space=pltpu.MemorySpace.SMEM)  # whole (3,) vector, resident

    if B >= batch_tile and B % batch_tile == 0:
        # Batched path: tile rows on the sublane axis, keep weight resident.
        return pl.pallas_call(
            _mylistdense_kernel,
            out_shape=out_shape,
            grid=(B // batch_tile,),
            in_specs=[pl.BlockSpec((batch_tile, 3), lambda i: (i, 0)),
                      w_spec],
            out_specs=pl.BlockSpec((batch_tile, 1), lambda i: (i, 0)),
            compiler_params=pltpu.CompilerParams(
                dimension_semantics=("parallel",)),
        )(x, w_fused)

    # Tiny / ragged batch: single invocation, full-array blocks (always legal).
    return pl.pallas_call(
        _mylistdense_kernel,
        out_shape=out_shape,
        in_specs=[pl.BlockSpec((B, 3), lambda: (0, 0)),
                  w_spec],
        out_specs=pl.BlockSpec((B, 1), lambda: (0, 0)),
    )(x, w_fused)


if __name__ == "__main__":
    key = jax.random.PRNGKey(0)
    k0, k1, k2 = jax.random.split(key, 3)

    # Deterministic "randn"-style parameters, shapes from the module __init__.
    w0 = jax.random.normal(k0, (3, 3), dtype=jnp.float32)
    w1 = jax.random.normal(k1, (3, 3), dtype=jnp.float32)
    w2 = jax.random.normal(k2, (3, 1), dtype=jnp.float32)

    # Module's example input is torch.ones(1, 3).
    x = jnp.ones((1, 3), dtype=jnp.float32)
    out = jax.block_until_ready(mylistdense_forward(x, w0, w1, w2))
    ref = x @ w0 @ w1 @ w2
    assert out.shape == (1, 1), out.shape
    assert jnp.allclose(out, ref, atol=1e-5, rtol=1e-5), (out, ref)

    # Also exercise the batched / tiled path (small in bytes: 512x3 f32).
    xb = jax.random.normal(jax.random.PRNGKey(1), (512, 3), dtype=jnp.float32)
    outb = jax.block_until_ready(mylistdense_forward(xb, w0, w1, w2))
    refb = xb @ w0 @ w1 @ w2
    assert outb.shape == (512, 1), outb.shape
    assert jnp.allclose(outb, refb, atol=1e-4, rtol=1e-4)

    print("KERNEL_OK")
</pallas_src>

<mosaic_0001>
module attributes {stable_mosaic.version = 11 : i64} {
  func.func @_mylistdense_kernel(%arg0: memref<1x3xf32, #tpu.memory_space<vmem>>, %arg1: memref<3xf32, #tpu.memory_space<smem>>, %arg2: memref<1x1xf32, #tpu.memory_space<vmem>>) attributes {dimension_semantics = [], scalar_prefetch = 0 : i64, scratch_operands = 0 : i64, tpu.core_type = #tpu.core_type<tc>} {
    %c0 = arith.constant 0 : index
    %c0_0 = arith.constant 0 : index
    %0 = vector.load %arg0[%c0, %c0_0] : memref<1x3xf32, #tpu.memory_space<vmem>>, vector<1x3xf32>
    %1 = vector.extract_strided_slice %0 {offsets = [0, 0], sizes = [1, 1], strides = [1, 1]} : vector<1x3xf32> to vector<1x1xf32>
    %c0_1 = arith.constant 0 : index
    %2 = memref.load %arg1[%c0_1] : memref<3xf32, #tpu.memory_space<smem>>
    %3 = vector.broadcast %2 : f32 to vector<1x1xf32>
    %4 = arith.mulf %1, %3 : vector<1x1xf32>
    %5 = vector.extract_strided_slice %0 {offsets = [0, 1], sizes = [1, 1], strides = [1, 1]} : vector<1x3xf32> to vector<1x1xf32>
    %c1 = arith.constant 1 : index
    %6 = memref.load %arg1[%c1] : memref<3xf32, #tpu.memory_space<smem>>
    %7 = vector.broadcast %6 : f32 to vector<1x1xf32>
    %8 = arith.mulf %5, %7 : vector<1x1xf32>
    %9 = arith.addf %4, %8 : vector<1x1xf32>
    %10 = vector.extract_strided_slice %0 {offsets = [0, 2], sizes = [1, 1], strides = [1, 1]} : vector<1x3xf32> to vector<1x1xf32>
    %c2 = arith.constant 2 : index
    %11 = memref.load %arg1[%c2] : memref<3xf32, #tpu.memory_space<smem>>
    %12 = vector.broadcast %11 : f32 to vector<1x1xf32>
    %13 = arith.mulf %10, %12 : vector<1x1xf32>
    %14 = arith.addf %9, %13 : vector<1x1xf32>
    %c0_2 = arith.constant 0 : index
    %c0_3 = arith.constant 0 : index
    %15 = vector.load %arg2[%c0_2, %c0_3] : memref<1x1xf32, #tpu.memory_space<vmem>>, vector<1x1xf32>
    tpu.vector_store %arg2[%c0_2, %c0_3], %14 {strides = array<i32>} : memref<1x1xf32, #tpu.memory_space<vmem>>, vector<1x1xf32>,
    return
  }
}

</mosaic_0001>

<bundles_post_ra>
// kernel: tpu_custom_call.1
= control target key start
LH: loop header
LB: loop body
LE: loop exit
PB: predicated region body
PF: predicated region fallthrough
CT: control target
= control target key end

     0   :  { %7 = vsyncpa [#allocation3], 0  ;;  %s169_s0 = inlined_call_operand.hbm [shape: f32[1,3], index: 0, kind: input, shape index: {}]   ;;  %s170_s1 = inlined_call_operand.vmem [shape: f32[3], index: 1, kind: input, shape index: {}]   ;;  %s171_s2 = inlined_call_operand.hbm [shape: f32[1,1], index: 2, kind: output, shape index: {}]  }
   0x1   :  { %8 = vsyncpa [#allocation5], 0 }
   0x2   :  { %9 = vsyncpa [#allocation4], 0  ;;  %s26_s11 = sshll.u32 %s170_s1, 4  ;;  %s140_s12 = smov [#allocation2]   ;;  %s27_s11 = int_to_ptr.vmem [resolvable:$true] %s26_s11 }
   0x3   :  { %s16_s13 = sshll.u32 %s140_s12, 4  ;;  %s17_s13 = int_to_ptr.vmem [resolvable:$true] %s16_s13 }
   0x4   :  { %s90_s14 = scalar_lea.vmem %s17_s13, 16  ;;  %s94_s15 = scalar_lea.vmem %s17_s13, 32 }
   0x5   :  { %p91_p0 = scmp.ne.s32.totalorder %s17_s13, %s90_s14  ;;  %p95_p1 = scmp.lt.s32.totalorder %s17_s13, %s17_s13 }
   0x6   :  { %p96_p2 = scmp.lt.s32.totalorder %s94_s15, %s90_s14 }
   0x8   :  { %p97_p3 = por %p96_p2, %p95_p1 }
   0xa   :  { %p98_p4 = pnand %p97_p3, %p91_p0 }
   0xc   :  { %101 = shalt.err (!%p98_p4)
}
   0xd   :  { %19 = dma.hbm_to_vmem [thread:$0]  %s169_s0, 16, %s17_s13, [#allocation3]  }
   0xe   :  { %s102_s18 = scalar_lea.vmem %s27_s11, 16  ;;  %p107_p6 = scmp.lt.s32.totalorder %s27_s11, %s27_s11 }
   0xf   :  { %p103_p5 = scmp.ne.s32.totalorder %s27_s11, %s102_s18  ;;  %p108_p7 = scmp.lt.s32.totalorder %s102_s18, %s102_s18 }
  0x11   :  { %p109_p8 = por %p108_p7, %p107_p6 }
  0x13   :  { %p110_p9 = pnand %p109_p8, %p103_p5 }
  0x15   :  { %113 = shalt.err (!%p110_p9)
}
  0x16   :  { %s141_s1 = smov [#allocation6]  }
  0x17   :  { %29 = dma.vmem_to_smem %s27_s11, 16, %s141_s1, [#allocation5]  }
  0x18   :  { %134 = dma.done.wait [#allocation3], 16  }
  0x19   :  { %135 = vsyncadd [#allocation3], 4294967280 }
  0x1a   :  { %136 = dma.done.wait [#allocation5], 16  }
  0x1b   :  { %137 = vsyncadd [#allocation5], 4294967280 }
  0x1c   :  { %36 = sfence }
  0x1d   :  { %s75_s19 = sld [smem:[#allocation6 + $0x1]]  ;;  %v37_v0 = vld [vmem:[#allocation2] sm:$0x1]  ;;  %s142_s0 = smov 127   ;;  %vm57_vm0 = vcmask 0  }
  0x1e   :  { %s76_s20 = sld [smem:[#allocation6 + $0x2]]  ;;  %s143_s21 = smov 126  }
  0x1f   :  { %s38_s22 = sld [smem:[#allocation6]]  ;;  %s144_s23 = smov [#allocation7]  }
  0x20   :  { %s65_s24 = sshll.u32 %s144_s23, 4  ;;  %s66_s24 = int_to_ptr.vmem [resolvable:$true] %s65_s24 }
  0x21   :  { %s114_s25 = scalar_lea.vmem %s66_s24, 16  ;;  %s118_s26 = scalar_lea.vmem %s66_s24, 32 }
  0x22   :  { %p115_p10 = scmp.ne.s32.totalorder %s66_s24, %s114_s25  ;;  %p119_p11 = scmp.lt.s32.totalorder %s66_s24, %s66_s24 }
  0x23   :  { %v42_v1 = vstv %s75_s19  ;;  %p120_p12 = scmp.lt.s32.totalorder %s118_s26, %s114_s25 }
  0x24   :  { %v43_v2 = vmul.f32 %v42_v1, %v37_v0  ;;  %v50_v3 = vstv %s76_s20 }
  0x25   :  { %v51_v4 = vmul.f32 %v50_v3, %v37_v0  ;;  %v39_v5 = vstv %s38_s22  ;;  %p121_p13 = por %p120_p12, %p119_p11 }
  0x26   :  { %45 = vrot.lane.b32.xlu0 %v43_v2, %s142_s0  ;;  %v40_v6 = vmul.f32 %v39_v5, %v37_v0 }
  0x27   :  { %p122_p0 = pnand %p121_p13, %p115_p10 }
  0x2a   :  { %53 = vrot.lane.b32.xlu0 %v51_v4, %s143_s21 }
  0x98   :  { %v46_v7 = vpop.permute.xlu0 %45 }
  0x99   :  { %v48_v8 = vadd.f32 %v46_v7, %v40_v6 }
  0x9c   :  { %v54_v9 = vpop.permute.xlu0 %53 }
  0x9d   :  { %v56_v10 = vadd.f32 %v54_v9, %v48_v8 }
  0x9f   :  { %58 = vst.msk [vmem:[#allocation7] sm:$0x1] %vm57_vm0, %v56_v10 }
  0xa0   :  { %125 = shalt.err (!%p122_p0)
}
  0xa1   :  { %68 = dma.vmem_to_hbm [thread:$0]  %s66_s24, 16, %s171_s2, [#allocation4]  }
  0xa2   :  { %138 = dma.done.wait [#allocation4], 16  }
  0xa3   :  { %139 = vsyncadd [#allocation4], 4294967280 }
  0xa4   :  { %72 = vsyncpa [#allocation3], 1 }
  0xa5   :  { %73 = vsyncpa [#allocation4], 1 }
  0xa6   :  { %74 = vsyncpa [#allocation5], 1 }

</bundles_post_ra>
